<compile_context>
chip_gen: v6e
topology: v6e:2x2x1
jax: 0.10.0
libtpu: 0.0.40
codegen_flags: <defaults>
</compile_context>

<pallas_src>
import jax
import jax.numpy as jnp
from jax import lax
from jax.experimental import pallas as pl
from jax.experimental.pallas import tpu as pltpu


def _sap_kernel(a_ref, o_ref):
    # a_ref: (TB, R, N) native-dtype tile; o_ref: (1, 8, 128) partial-sum slab.
    A = a_ref[...]                                        # no f32 copy of the tile
    _, r, _ = A.shape

    # Batched Gram on the MXU: G[b] = A[b] @ A[b]^T, f32 accumulation.
    # Explicit dot_general (contract last dims, batch dim 0) -> no transpose.
    G = lax.dot_general(
        A, A,
        dimension_numbers=(((2,), (2,)), ((0,), (0,))),
        preferred_element_type=jnp.float32)               # (TB, R, R) f32

    # Cancellation-free ||G - I||_F^2: subtract 1 on the diagonal, square, sum.
    row = lax.broadcasted_iota(jnp.int32, (1, r, r), 1)
    col = lax.broadcasted_iota(jnp.int32, (1, r, r), 2)
    D = jnp.where(row == col, G - 1.0, G)                 # (TB, R, R)
    partial = jnp.sum(D * D)

    # Lane-dense (8,128) unmasked store; partials are summed in the wrapper.
    o_ref[...] = jnp.full(o_ref.shape, partial, dtype=o_ref.dtype)


def _pick_batch_tile(B, R, N, itemsize, vmem_budget_bytes, max_tb):
    """Largest divisor of B whose in-kernel footprint fits the VMEM budget."""
    bytes_in = R * N * itemsize            # one (R, N) slice, native dtype
    bytes_g = R * R * 4                    # one f32 Gram slice
    per_slice = 2 * bytes_in + 2 * bytes_g  # double-buffered input + G + masked D
    target = max(1, min(B, max_tb, vmem_budget_bytes // max(1, per_slice)))
    if B >= 2:
        target = min(target, B // 2)       # >= 2 grid tiles -> v7x megacore
    tb = 1                                  # 1 always divides B -> never pad
    for d in range(1, target + 1):
        if B % d == 0:
            tb = d
    return tb


def self_attention_penalization(A, *, vmem_budget_bytes=32 << 20, max_tb=1024):
    """A: (B, R, N) float -> scalar float32:  sum_b ||A_b A_b^T - I||_F^2."""
    B, R, N = A.shape
    itemsize = jnp.dtype(A.dtype).itemsize

    TB = _pick_batch_tile(B, R, N, itemsize, vmem_budget_bytes, max_tb)
    num_tiles = B // TB                    # exact: TB divides B, no jnp.pad copy

    # Explicit scoped-VMEM limit sized to what the kernel actually allocates
    # (double-buffered input + f32 Gram intermediates + output slabs), with
    # headroom, clamped to stay inside v7x's 64 MiB physical VMEM per core.
    est = TB * (2 * R * N * itemsize + 2 * R * R * 4) + 2 * 8 * 128 * 4
    vmem_limit = int(min(max(est + (4 << 20), 16 << 20), 48 << 20))

    # TODO(synk): add an N-axis reduction grid (f32 VMEM accumulator scratch,
    # dimension_semantics=("parallel","arbitrary")) for the case where a single
    # (R, N) slice alone exceeds the scoped-VMEM budget.

    partials = pl.pallas_call(
        _sap_kernel,
        out_shape=jax.ShapeDtypeStruct((num_tiles, 8, 128), jnp.float32),
        grid_spec=pltpu.PrefetchScalarGridSpec(
            num_scalar_prefetch=0,
            grid=(num_tiles,),
            in_specs=[pl.BlockSpec((TB, R, N), lambda t: (t, 0, 0))],
            out_specs=pl.BlockSpec((1, 8, 128), lambda t: (t, 0, 0)),
        ),
        compiler_params=pltpu.CompilerParams(
            dimension_semantics=("parallel",),
            vmem_limit_bytes=vmem_limit),
    )(A)

    return jnp.sum(partials[:, 0, 0])


def _reference(A):
    """Plain-JAX reference matching the PyTorch forward exactly."""
    _, R, _ = A.shape
    Af = A.astype(jnp.float32)
    G = jnp.einsum("brn,bsn->brs", Af, Af) - jnp.eye(R, dtype=jnp.float32)
    return jnp.sum(G * G)


if __name__ == "__main__":
    key = jax.random.PRNGKey(0)
    B, R, N = 2, 8, 32            # batch, attention hops, sequence length
    A = jax.random.normal(key, (B, R, N), dtype=jnp.float32)

    out = self_attention_penalization(A)
    out = jax.block_until_ready(out)

    ref = _reference(A)
    assert jnp.allclose(out, ref, rtol=1e-5, atol=1e-5), (out, ref)
    print("KERNEL_OK")
</pallas_src>

<mosaic_0001>
module attributes {stable_mosaic.version = 11 : i64} {
  func.func @_sap_kernel(%arg0: i32, %arg1: memref<1x8x32xf32, #tpu.memory_space<vmem>>, %arg2: memref<1x8x128xf32, #tpu.memory_space<vmem>>) attributes {dimension_semantics = [#tpu.dimension_semantics<parallel>], iteration_bounds = array<i64: 2>, scalar_prefetch = 0 : i64, scratch_operands = 0 : i64, tpu.core_type = #tpu.core_type<tc>, window_params = [{transform_indices = @transform_0, window_bounds = array<i64: 1, 8, 32>}, {transform_indices = @transform_1, window_bounds = array<i64: 1, 8, 128>}]} {
    %c0 = arith.constant 0 : index
    %c0_0 = arith.constant 0 : index
    %c0_1 = arith.constant 0 : index
    %0 = vector.load %arg1[%c0, %c0_0, %c0_1] : memref<1x8x32xf32, #tpu.memory_space<vmem>>, vector<1x8x32xf32>
    %cst = arith.constant dense<0.000000e+00> : vector<1x8x8xf32>
    %1 = tpu.matmul %0, %0, %cst {dimension_numbers = #tpu.dot_dimension_numbers<[2], [2], [1], [1], [0, 0, 0, 1, 1, 1], [0], [0]>} : vector<1x8x32xf32>, vector<1x8x32xf32>, vector<1x8x8xf32> -> vector<1x8x8xf32>
    %2 = tpu.iota {dimensions = array<i32: 1>} : vector<1x8x8xi32>
    %3 = tpu.iota {dimensions = array<i32: 2>} : vector<1x8x8xi32>
    %4 = arith.cmpi eq, %2, %3 : vector<1x8x8xi32>
    %cst_2 = arith.constant 1.000000e+00 : f32
    %5 = vector.broadcast %cst_2 : f32 to vector<1x8x8xf32>
    %6 = arith.subf %1, %5 : vector<1x8x8xf32>
    %7 = arith.select %4, %6, %1 : vector<1x8x8xi1>, vector<1x8x8xf32>
    %8 = arith.mulf %7, %7 : vector<1x8x8xf32>
    %9 = vector.shape_cast %8 : vector<1x8x8xf32> to vector<1x1x8x8xf32>
    %cst_3 = arith.constant dense<0.000000e+00> : vector<1xf32>
    %10 = vector.multi_reduction <add>, %9, %cst_3 [1, 2, 3] : vector<1x1x8x8xf32> to vector<1xf32>
    %11 = vector.shape_cast %10 : vector<1xf32> to vector<1x1x1x1xf32>
    %12 = vector.extract %11[0, 0, 0, 0] : f32 from vector<1x1x1x1xf32>
    %13 = vector.broadcast %12 : f32 to vector<1x8x128xf32>
    %c0_4 = arith.constant 0 : index
    %c0_5 = arith.constant 0 : index
    %c0_6 = arith.constant 0 : index
    %14 = vector.load %arg2[%c0_4, %c0_5, %c0_6] : memref<1x8x128xf32, #tpu.memory_space<vmem>>, vector<1x8x128xf32>
    tpu.vector_store %arg2[%c0_4, %c0_5, %c0_6], %13 {strides = array<i32>} : memref<1x8x128xf32, #tpu.memory_space<vmem>>, vector<1x8x128xf32>,
    return
  }
  func.func @transform_0(%arg0: i32) -> (i32, i32, i32) {
    %c0_i32 = arith.constant 0 : i32
    %c0_i32_0 = arith.constant 0 : i32
    %c0_i32_1 = arith.constant 0 : i32
    return %arg0, %c0_i32, %c0_i32_0 : i32, i32, i32
  }
  func.func @transform_1(%arg0: i32) -> (i32, i32, i32) {
    %c0_i32 = arith.constant 0 : i32
    %c0_i32_0 = arith.constant 0 : i32
    %c0_i32_1 = arith.constant 0 : i32
    return %arg0, %c0_i32, %c0_i32_0 : i32, i32, i32
  }
}

</mosaic_0001>

<bundles_post_ra>
// kernel: tpu_custom_call.1
= control target key start
LH: loop header
LB: loop body
LE: loop exit
PB: predicated region body
PF: predicated region fallthrough
CT: control target
= control target key end

     0   :  { %6 = vsyncpa [#allocation3], 0  ;;  %s643_s0 = inlined_call_operand.hbm [shape: f32[2,8,32], index: 0, kind: input, shape index: {}]   ;;  %s644_s1 = inlined_call_operand.hbm [shape: f32[2,8,128], index: 1, kind: output, shape index: {}]  }
   0x1   :  { %8 = vsyncpa [#allocation3 + $0x1], 0 }
   0x2   :  { %9 = vsyncpa [#allocation4], 0 }
   0x3   :  { %11 = vsyncpa [#allocation4 + $0x1], 0  ;;  %s492_s6 = smov 0   ;;  %s494_s7 = smov 0  }
   0x4   :  { %s496_s8 = smov 0   ;;  %s498_s9 = smov 0  }
   0x5 LB: > { %s513_s10 = sadd.s32 4294967295, %s476_s9   ;;  %s312_s11 = sadd.s32 4294967294, %s476_s9   ;;  %s476_s9 = sphi %s498_s9, %s661_s9   ;;  %s472_s8 = sphi %s496_s8, %s660_s8   ;;  %s468_s7 = sphi %s494_s7, %s659_s7   ;;  %s464_s6 = sphi %s492_s6, %s658_s6  }
   0x6   : > { %s517_s12 = sadd.s32 1, %s476_s9   ;;  %s24_s13 = sadd.s32 1, %s472_s8 }
   0x7   : > { %s21_s14 = ssub.s32 %s476_s9, %s517_s12  ;;  %p31_p0 = scmp.ne.s32.totalorder %s472_s8, %s468_s7 }
   0x8   : > { %p22_p1 = scmp.eq.s32.totalorder %s21_s14, 0  ;;  %p32_p2 = scmp.eq.s32.totalorder %s476_s9, 0 }
   0x9   : > { %p37_p3 = scmp.ne.s32.totalorder %s468_s7, %s464_s6  ;;  %p38_p4 = scmp.eq.s32.totalorder %s513_s10, 0 }
   0xa   : > { %s529_s15 = scalar_select %p22_p1, %s472_s8, %s24_s13  }
   0xb   : > { %p531_p5 = por %p32_p2, %p31_p0  ;;  %p535_p6 = por %p38_p4, %p37_p3 }
   0xc   : > { %p61_p7 = scmp.eq.s32.totalorder %s513_s10, 1  ;;  %p67_p8 = scmp.eq.s32.totalorder %s312_s11, 1 }
   0xd   : > { %s648_s17 = scalar_select %p535_p6, 1, 0 }
   0xe   : > { %p348_p10 = scmp.lt.s32.totalorder %s476_s9, 2  ;;  %p542_p11 = por %p61_p7, %p31_p0 }
   0xf   : > { %p546_p12 = por %p67_p8, %p37_p3  ;;  %s87_s20 = sand.u32 1, %s472_s8  }
  0x10   : > { %s649_s18 = scalar_select %p542_p11, 1, 0 }
  0x11   : > { %s650_s19 = scalar_select %p546_p12, 1, 0 }
  0x12   : > { %s316_s21 = sshll.u32 %s476_s9, 7  ;;  %s315_s22 = sshll.u32 %s87_s20, 3 }
  0x13   : > { %s555_s25 = scalar_lea.hbm %s643_s0, %s316_s21  ;;  %s91_s26 = scalar_lea.vmem [#allocation2], %s315_s22 }
  0x14   : > { %s98_s27 = sshll.u32 %s91_s26, 4  ;;  %p559_p13 = pnand %p348_p10, %p531_p5  ;;  %s563_s27 = int_to_ptr.vmem [resolvable:$true] %s98_s27 }
  0x15   : > { %s88_s29 = scalar_lea.sflag [#allocation3], %s87_s20  ;;  %s384_s30 = scalar_lea.hbm %s555_s25, 128 }
  0x16   : > { %p385_p2 = scmp.ne.s32.totalorder %s555_s25, %s384_s30  ;;  %p386_p3 = pneg %p559_p13 }
  0x17   : > { %s389_s4 = scalar_lea.hbm %s643_s0, 256  ;;  %p390_p5 = scmp.lt.s32.totalorder %s555_s25, %s643_s0 }
  0x18   : > { %p387_p4 = pnand %p386_p3, %p385_p2  ;;  %p391_p8 = scmp.lt.s32.totalorder %s389_s4, %s384_s30 }
  0x1a   : > { %p388_p7 = pneg %p387_p4  ;;  %p392_p10 = por %p391_p8, %p390_p5 }
  0x1c   : > { %p393_p9 = pnand %p392_p10, %p388_p7 }
  0x1e   : > { %396 = shalt.err (!%p393_p9)
}
  0x1f   : > { %s397_s13 = scalar_lea.vmem %s563_s27, 128  ;;  %s478_s14 = smov [#allocation2]  }
  0x20   : > { %p398_p0 = scmp.ne.s32.totalorder %s563_s27, %s397_s13  ;;  %s402_s16 = sshll.u32 %s478_s14, 4  ;;  %s403_s16 = int_to_ptr.vmem [resolvable:$false] %s402_s16 }
  0x21   : > { %s404_s20 = scalar_lea.vmem %s403_s16, 256  ;;  %p405_p4 = scmp.lt.s32.totalorder %s563_s27, %s403_s16 }
  0x22   : > { %p400_p1 = pnand %p398_p0, %p386_p3  ;;  %p406_p12 = scmp.lt.s32.totalorder %s404_s20, %s397_s13 }
  0x24   : > { %p401_p2 = pneg %p400_p1  ;;  %p407_p11 = por %p406_p12, %p405_p4 }
  0x26   : > { %p408_p6 = pnand %p407_p11, %p401_p2 }
  0x28   : > { %411 = shalt.err (!%p408_p6)
}
  0x29   : > { %343 = dma.hbm_to_vmem [thread:$0]  (!%p559_p13), %s555_s25, 128, %s563_s27, %s88_s29  }
  0x2a   : > { %p652_p9 = scmp.lt.s32.totalorder %s476_s9, 3  ;;  %p653_p7 = scmp.ge.s32.totalorder %s476_s9, 1 }
  0x2c   : > { %p104_p0 = pnand %p653_p7, %p652_p9 }
  0x2d   : > { %s590_s21 = sand.u32 (!%p104_p0), 1, %s468_s7   ;;  %p654_p6 = scmp.ne.s32.totalorder (!%p104_p0), %s648_s17, 0 }
  0x2e   : > { %107 = sbr.rel (%p104_p0) target bundleno = 470 (0x1d6), region = 24  ;;  %s318_s22 = sshll.u32 (!%p104_p0), %s590_s21, 3 }
  0x2f   : > { %s110_s23 = scalar_lea.sflag (!%p104_p0), [#allocation3], %s590_s21  ;;  %s113_s24 = scalar_lea.vmem (!%p104_p0), [#allocation2], %s318_s22 }
  0x33   : > { %455 = dma.done.wait (%p654_p6), %s110_s23, 128  }
  0x34   : > { %457 = vsyncadd (%p654_p6), %s110_s23, 4294967168  ;;  %v479_v0 = vmov 0.0   ;;  %vm480_vm0 = vmmov 0   ;;  %vm133_vm1 = vcmask 261120   ;;  %v132_v1 = vld [vmem:[%s113_s24] sm:$0xff]  ;;  %v207_v2 = vlaneseq  ;;  %s131_s17 = scalar_lea.vmem [#allocation5], %s318_s22 }
  0x35   : > { %329 = vmatprep.subr.mxu0 %v479_v0  ;;  %331 = vmatprep.mubr.msk.f32.mxu0 %vm480_vm0, %v479_v0  ;;  %vm215_vm3 = vcmask 64512   ;;  %s242_s25 = sshll.u32 %s131_s17, 4  ;;  %s324_s26 = sshll.u32 %s513_s10, 7  ;;  %s603_s25 = int_to_ptr.vmem [resolvable:$true] %s242_s25 }
  0x36   : > { %330 = vmatpush3.xpose.msk.msra.mxu0 %vm133_vm1, %v132_v1  ;;  %v208_v3 = vshrl.u32 %v207_v2, 7  ;;  %v210_v4 = vand.u32 127, %v207_v2  ;;  %s240_s30 = scalar_lea.hbm %s644_s1, %s324_s26  ;;  %s229_s2 = scalar_lea.sflag [#allocation4], %s590_s21 }
  0x37   : > { %s412_s3 = scalar_lea.vmem %s603_s25, 128  ;;  %p655_p12 = scmp.ne.s32.totalorder %s649_s18, 0 }
  0x38   : > { %vm211_vm2 = vcmp.eq.s32.totalorder %v208_v3, %v210_v4  ;;  %p413_p11 = scmp.ne.s32.totalorder %s603_s25, %s412_s3  ;;  %s481_s4 = smov [#allocation5]  }
  0x39   : > { %332 = vmatmul.mubr.msk.f32.vlgmr.msra.gmra.mxu0 %vm133_vm1, %v132_v1  ;;  %s416_s10 = sshll.u32 %s481_s4, 4  ;;  %s417_s10 = int_to_ptr.vmem [resolvable:$false] %s416_s10 }
  0x3a   : > { %p414_p13 = pnand %p413_p11, %p655_p12  ;;  %s418_s5 = scalar_lea.vmem %s417_s10, 256 }
  0x3b   : > { %p419_p3 = scmp.lt.s32.totalorder %s603_s25, %s417_s10  ;;  %p420_p5 = scmp.lt.s32.totalorder %s418_s5, %s412_s3 }
  0x3c   : > { %p415_p1 = pneg %p414_p13 }
  0x3d   : > { %p421_p8 = por %p420_p5, %p419_p3 }
  0x3f   : > { %p422_p10 = pnand %p421_p8, %p415_p1 }
  0xf9   : > { %v203_v5 = vpop.f32.mrf.mxu0 }
  0xfa   : > { %v322_v6 = vadd.f32 -1.0, %v203_v5 }
  0xfb   : > { %v333_v7 = vpop.f32.mrf.mxu0 }
  0xfc   : > { %v213_v8 = vsel %vm211_vm2, %v322_v6, %v203_v5 }
  0xfd   : > { %v214_v9 = vmul.f32 %v213_v8, %v213_v8 }
  0xff   : > { %v216_v10 = vsel %vm215_vm3, %v214_v9, 0.0 }
 0x100   : > { %217 = vadd.xlane.f32.xlu0 %v216_v10 }
 0x189   : > { %v218_v11 = vpop.xlane.xlu0 %217 }
 0x18a   : > { %v219_v12 = vrot.slane %v218_v11, 4 }
 0x18c   : > { %v220_v13 = vadd.f32 %v219_v12, %v218_v11 }
 0x18e   : > { %v221_v14 = vrot.slane %v220_v13, 2 }
 0x190   : > { %v222_v15 = vadd.f32 %v221_v14, %v220_v13 }
 0x192   : > { %v223_v16 = vrot.slane %v222_v15, 1 }
 0x194   : > { %v224_v17 = vadd.f32 %v223_v16, %v222_v15 }
 0x196   : > { %334 = vpush %v224_v17 }
 0x1c7   : > { %s335_s27 = spop %334 }
 0x1c8   : > { %v226_v18 = vstv %s335_s27 }
 0x1c9   : > { %227 = vst [vmem:[%s131_s17] sm:$0xff] %v226_v18 }
 0x1ca   : > { %425 = shalt.err (!%p422_p10)
}
 0x1cb   : > { %s426_s11 = scalar_lea.hbm %s240_s30, 128  ;;  %s430_s16 = scalar_lea.hbm %s644_s1, 256 }
 0x1cc   : > { %p427_p2 = scmp.ne.s32.totalorder %s240_s30, %s426_s11  ;;  %p431_p7 = scmp.lt.s32.totalorder %s240_s30, %s644_s1 }
 0x1cd   : > { %p432_p0 = scmp.lt.s32.totalorder %s430_s16, %s426_s11 }
 0x1ce   : > { %p428_p4 = pnand %p427_p2, %p655_p12 }
 0x1cf   : > { %p433_p6 = por %p432_p0, %p431_p7 }
 0x1d0   : > { %p429_p9 = pneg %p428_p4 }
 0x1d2   : > { %p434_p11 = pnand %p433_p6, %p429_p9 }
 0x1d4   : > { %437 = shalt.err (!%p434_p11)
}
 0x1d5   : > { %338 = dma.vmem_to_hbm [thread:$0]  (%p655_p12), %s603_s25, 128, %s240_s30, %s229_s2  }
 0x1d6 PF: > { %s254_s22 = sand.u32 1, %s464_s6   ;;  %p656_p13 = scmp.ne.s32.totalorder %s650_s19, 0 }
 0x1d7   : > { %p657_p1 = scmp.ge.s32.totalorder %s476_s9, 2  ;;  %s255_s23 = scalar_lea.sflag [#allocation4], %s254_s22 }
 0x1d9   : > { %p345_p3 = pnand %p657_p1, %p656_p13 }
 0x1db   : > { %p346_p5 = pneg %p345_p3 }
 0x1dd   : > { %459 = dma.done.wait (%p346_p5), %s255_s23, 128  }
 0x1de   : > { %461 = vsyncadd (%p346_p5), %s255_s23, 4294967168  ;;  %p14_p8 = scmp.ge.s32.totalorder %s517_s12, 4   ;;  %s658_s6 = smov %s468_s7 }
 0x1df   : > { %s659_s7 = smov %s472_s8  ;;  %s660_s8 = smov %s529_s15 }
 0x1e0   : > { %s661_s9 = smov %s517_s12  ;;  %16 = sbr.rel (!%p14_p8) target bundleno = 5 (0x5), region = 69 }
 0x1e5   :  { %260 = vsyncpa [#allocation3], 1 }
 0x1e6   :  { %262 = vsyncpa [#allocation3 + $0x1], 1 }
 0x1e7   :  { %263 = vsyncpa [#allocation4], 1 }
 0x1e8   :  { %265 = vsyncpa [#allocation4 + $0x1], 1 }

</bundles_post_ra>
